<compile_context>
chip_gen: v7x
topology: tpu7x:2x2x1
jax: 0.10.0
libtpu: 0.0.40
codegen_flags: <defaults>
</compile_context>

<pallas_src>
import functools

import jax
import jax.numpy as jnp
from jax import lax
from jax.experimental import pallas as pl
from jax.experimental.pallas import tpu as pltpu

NUM_GROUPS = 32
EPS = 1e-6
LANE = 128


def _stats_kernel(f_ref, gamma_ref, beta_ref, rmat_ref, bmat_ref, ss_ref,
                  *, n_per_group):
    """Pass 1: per-channel sum/sumsq over HW tiles -> folded per-channel scale/shift."""
    t = pl.program_id(1)

    @pl.when(t == 0)
    def _():
        ss_ref[...] = jnp.zeros(ss_ref.shape, ss_ref.dtype)

    f = f_ref[0].astype(jnp.float32)                         # (C_f, TILE)
    tile_stats = jnp.concatenate(
        [jnp.sum(f, axis=1, keepdims=True),
         jnp.sum(f * f, axis=1, keepdims=True)], axis=1)     # (C_f, 2)
    ss_ref[0] += tile_stats                                  # single RMW of the small block

    @pl.when(t == pl.num_programs(1) - 1)
    def _():
        stats = ss_ref[0]                                    # (C_f, 2) [sum, sumsq]
        # group reduce (G, C_f) @ (C_f, 2) then broadcast back (C_f, G) @ (G, 2)
        grp = jnp.dot(rmat_ref[...], stats,
                      preferred_element_type=jnp.float32)    # (G, 2)
        per_ch = jnp.dot(bmat_ref[...], grp,
                         preferred_element_type=jnp.float32)  # (C_f, 2)
        inv_n = 1.0 / n_per_group
        mean = per_ch[:, 0:1] * inv_n
        var = per_ch[:, 1:2] * inv_n - mean * mean
        inv_std = lax.rsqrt(var + EPS)                       # EUP
        scale = gamma_ref[...] * inv_std                     # (C_f, 1)
        shift = beta_ref[...] - mean * scale                 # (C_f, 1)
        ss_ref[0] = jnp.concatenate([scale, shift], axis=1)


def _apply_kernel(ss_ref, f_ref, zq_ref, wyb_ref, byb_ref, o_ref):
    """Pass 2: normalize with folded scale/shift and modulate with both 1x1 convs."""
    c_f = f_ref.shape[1]
    f = f_ref[0].astype(jnp.float32)                         # (C_f, TILE)
    zq = zq_ref[0].astype(jnp.float32)                       # (C_z, TILE)

    scale = ss_ref[0, :, 0:1]                                # (C_f, 1)
    shift = ss_ref[0, :, 1:2]                                # (C_f, 1)
    norm_f = f * scale + shift                               # one FMA / element

    # Both 1x1 convs in a single stacked MXU matmul: (2*C_f, C_z) @ (C_z, TILE).
    yb = jnp.dot(wyb_ref[...], zq,
                 preferred_element_type=jnp.float32) + byb_ref[...]
    y = yb[:c_f, :]
    b = yb[c_f:, :]

    o_ref[0] = (norm_f * y + b).astype(o_ref.dtype)


def spatial_norm(f, zq, gamma, beta, wy, by, wb, bb, *, hw_tile=None):
    """f: (B, C_f, H, W), zq: (B, C_z, Hz, Wz) — NCHW, matching the PyTorch module."""
    B, C_f, H, W = f.shape
    _, C_z, Hz, Wz = zq.shape
    assert C_f % NUM_GROUPS == 0, "GroupNorm(32) requires C_f % 32 == 0"
    hw = H * W

    # --- nearest-neighbor upsample of zq (JAX glue, pure indexing) ----------
    if H % Hz == 0 and W % Wz == 0:
        rh, rw = H // Hz, W // Wz
        zq_up = jnp.broadcast_to(
            zq[:, :, :, None, :, None],
            (B, C_z, Hz, rh, Wz, rw)).reshape(B, C_z, H, W)
    else:
        # PyTorch 'nearest' semantics: src = floor(dst * in / out); single flat gather.
        h_idx = (jnp.arange(H) * Hz) // H
        w_idx = (jnp.arange(W) * Wz) // W
        flat_idx = (h_idx[:, None] * Wz + w_idx[None, :]).reshape(-1)
        zq_up = zq.reshape(B, C_z, Hz * Wz)[:, :, flat_idx].reshape(B, C_z, H, W)

    f_flat = f.reshape(B, C_f, hw)
    zq_flat = zq_up.reshape(B, C_z, hw)

    # --- lane-dense spatial tile, auto-sized against a VMEM budget -----------
    isz = jnp.dtype(f.dtype).itemsize
    # VMEM bytes needed per spatial lane (double-buffered tiles + f32 temporaries).
    per_lane_1 = 2 * C_f * isz + 3 * C_f * 4
    per_lane_2 = 2 * (C_f + C_z) * isz + 2 * C_f * isz + (5 * C_f + C_z) * 4
    const_b = (2 * C_f * C_z + 2 * NUM_GROUPS * C_f + 8 * C_f) * 4 * 2
    budget = 20 << 20                                        # safe on every TPU generation

    hw_lanes = pl.cdiv(hw, LANE) * LANE
    if hw_tile is None:
        lanes = max(LANE, max(0, budget - const_b) // per_lane_2)
        tile = max(LANE, min(8192, hw_lanes, (lanes // LANE) * LANE))
    else:
        tile = int(min(int(hw_tile), hw_lanes))
        tile = max(LANE, (tile // LANE) * LANE)

    hw_pad = pl.cdiv(hw, tile) * tile
    if hw_pad != hw:
        pad = [(0, 0), (0, 0), (0, hw_pad - hw)]
        f_flat = jnp.pad(f_flat, pad)        # zero pad: does not perturb sum/sumsq
        zq_flat = jnp.pad(zq_flat, pad)
    n_tiles = hw_pad // tile

    # --- small constant operands ---------------------------------------------
    group_id = jnp.arange(C_f) // (C_f // NUM_GROUPS)
    rmat = (jnp.arange(NUM_GROUPS)[:, None] == group_id[None, :]).astype(jnp.float32)
    bmat = rmat.T                                            # (C_f, NUM_GROUPS)
    gamma_c = gamma.astype(jnp.float32).reshape(C_f, 1)
    beta_c = beta.astype(jnp.float32).reshape(C_f, 1)
    wyb = jnp.concatenate([wy, wb], axis=0).astype(jnp.float32)          # (2C_f, C_z)
    byb = jnp.concatenate([by, bb], axis=0).astype(jnp.float32).reshape(2 * C_f, 1)

    est1 = per_lane_1 * tile + const_b
    est2 = per_lane_2 * tile + const_b

    def _limit(est):
        want = max(2 * est, 32 << 20)
        return int(min(want, max(48 << 20, (5 * est) // 4)))

    # ---------------- pass 1: group statistics -> folded scale / shift -------
    stats = pl.pallas_call(
        functools.partial(_stats_kernel,
                          n_per_group=float((C_f // NUM_GROUPS) * hw)),
        out_shape=jax.ShapeDtypeStruct((B, C_f, 2), jnp.float32),
        grid_spec=pltpu.PrefetchScalarGridSpec(
            num_scalar_prefetch=0,
            grid=(B, n_tiles),
            in_specs=[
                pl.BlockSpec((1, C_f, tile), lambda b, t: (b, 0, t)),   # f tile
                pl.BlockSpec((C_f, 1), lambda b, t: (0, 0)),            # gamma
                pl.BlockSpec((C_f, 1), lambda b, t: (0, 0)),            # beta
                pl.BlockSpec((NUM_GROUPS, C_f), lambda b, t: (0, 0)),   # group reduce mat
                pl.BlockSpec((C_f, NUM_GROUPS), lambda b, t: (0, 0)),   # group bcast mat
            ],
            out_specs=pl.BlockSpec((1, C_f, 2), lambda b, t: (b, 0, 0)),
        ),
        compiler_params=pltpu.CompilerParams(
            dimension_semantics=("parallel", "arbitrary"),
            vmem_limit_bytes=_limit(est1)),
    )(f_flat, gamma_c, beta_c, rmat, bmat)

    # ---------------- pass 2: normalize + 1x1-conv modulation ----------------
    out = pl.pallas_call(
        _apply_kernel,
        out_shape=jax.ShapeDtypeStruct((B, C_f, hw_pad), f.dtype),
        grid_spec=pltpu.PrefetchScalarGridSpec(
            num_scalar_prefetch=0,
            grid=(B, n_tiles),
            in_specs=[
                pl.BlockSpec((1, C_f, 2), lambda b, t: (b, 0, 0)),      # folded scale/shift
                pl.BlockSpec((1, C_f, tile), lambda b, t: (b, 0, t)),   # f tile
                pl.BlockSpec((1, C_z, tile), lambda b, t: (b, 0, t)),   # zq (upsampled) tile
                pl.BlockSpec((2 * C_f, C_z), lambda b, t: (0, 0)),      # stacked conv weights
                pl.BlockSpec((2 * C_f, 1), lambda b, t: (0, 0)),        # stacked conv biases
            ],
            out_specs=pl.BlockSpec((1, C_f, tile), lambda b, t: (b, 0, t)),
        ),
        compiler_params=pltpu.CompilerParams(
            dimension_semantics=("parallel", "parallel"),               # dual-TC even at B=1
            vmem_limit_bytes=_limit(est2)),
    )(stats, f_flat, zq_flat, wyb, byb)

    if hw_pad != hw:
        out = out[:, :, :hw]
    return out.reshape(B, C_f, H, W)


def reference(f, zq, gamma, beta, wy, by, wb, bb):
    """Plain-JAX reference mirroring the PyTorch module."""
    B, C_f, H, W = f.shape
    _, C_z, Hz, Wz = zq.shape
    h_idx = (jnp.arange(H) * Hz) // H
    w_idx = (jnp.arange(W) * Wz) // W
    zq_up = zq[:, :, h_idx, :][:, :, :, w_idx]

    fg = f.reshape(B, NUM_GROUPS, C_f // NUM_GROUPS, H, W)
    mean = jnp.mean(fg, axis=(2, 3, 4), keepdims=True)
    var = jnp.mean((fg - mean) ** 2, axis=(2, 3, 4), keepdims=True)
    norm = ((fg - mean) / jnp.sqrt(var + EPS)).reshape(B, C_f, H, W)
    norm = norm * gamma[None, :, None, None] + beta[None, :, None, None]

    y = jnp.einsum('oc,bchw->bohw', wy, zq_up) + by[None, :, None, None]
    b = jnp.einsum('oc,bchw->bohw', wb, zq_up) + bb[None, :, None, None]
    return norm * y + b


def _run_case(key, B, C_f, C_z, H, W, Hz, Wz, hw_tile):
    ks = jax.random.split(key, 8)
    f = jax.random.normal(ks[0], (B, C_f, H, W), dtype=jnp.float32)
    zq = jax.random.normal(ks[1], (B, C_z, Hz, Wz), dtype=jnp.float32)
    gamma = 1.0 + 0.1 * jax.random.normal(ks[2], (C_f,), dtype=jnp.float32)
    beta = 0.1 * jax.random.normal(ks[3], (C_f,), dtype=jnp.float32)
    wy = 0.2 * jax.random.normal(ks[4], (C_f, C_z), dtype=jnp.float32)
    by = 0.1 * jax.random.normal(ks[5], (C_f,), dtype=jnp.float32)
    wb = 0.2 * jax.random.normal(ks[6], (C_f, C_z), dtype=jnp.float32)
    bb = 0.1 * jax.random.normal(ks[7], (C_f,), dtype=jnp.float32)

    out = jax.block_until_ready(
        spatial_norm(f, zq, gamma, beta, wy, by, wb, bb, hw_tile=hw_tile))
    ref = jax.block_until_ready(reference(f, zq, gamma, beta, wy, by, wb, bb))
    assert out.shape == (B, C_f, H, W)
    err = float(jnp.max(jnp.abs(out - ref)))
    assert err < 2e-3, f"mismatch vs reference: {err}"


if __name__ == "__main__":
    key = jax.random.PRNGKey(0)
    k1, k2 = jax.random.split(key)
    # Case A: multi-tile spatial accumulation (HW=256, tile=128 -> 2 tiles), integer ratio upsample.
    _run_case(k1, B=2, C_f=64, C_z=8, H=16, W=16, Hz=8, Wz=8, hw_tile=128)
    # Case B: auto tile, non-integer upsample ratio (gather path), padded spatial axis (144 -> 256).
    _run_case(k2, B=1, C_f=32, C_z=4, H=12, W=12, Hz=5, Wz=5, hw_tile=None)
    print("KERNEL_OK")
</pallas_src>

<mosaic_0001>
module attributes {stable_mosaic.version = 11 : i64} {
  func.func @_stats_kernel(%arg0: i32, %arg1: i32, %arg2: memref<1x64x128xf32, #tpu.memory_space<vmem>>, %arg3: memref<64x1xf32, #tpu.memory_space<vmem>>, %arg4: memref<64x1xf32, #tpu.memory_space<vmem>>, %arg5: memref<32x64xf32, #tpu.memory_space<vmem>>, %arg6: memref<64x32xf32, #tpu.memory_space<vmem>>, %arg7: memref<1x64x2xf32, #tpu.memory_space<vmem>>) attributes {dimension_semantics = [#tpu.dimension_semantics<parallel>, #tpu.dimension_semantics<arbitrary>], iteration_bounds = array<i64: 2, 2>, scalar_prefetch = 0 : i64, scratch_operands = 0 : i64, tpu.core_type = #tpu.core_type<tc>, window_params = [{transform_indices = @transform_0, window_bounds = array<i64: 1, 64, 128>}, {pipeline_mode = #tpu.pipeline_mode<synchronous>, transform_indices = @transform_1, window_bounds = array<i64: 64, 1>}, {pipeline_mode = #tpu.pipeline_mode<synchronous>, transform_indices = @transform_2, window_bounds = array<i64: 64, 1>}, {pipeline_mode = #tpu.pipeline_mode<synchronous>, transform_indices = @transform_3, window_bounds = array<i64: 32, 64>}, {pipeline_mode = #tpu.pipeline_mode<synchronous>, transform_indices = @transform_4, window_bounds = array<i64: 64, 32>}, {transform_indices = @transform_5, window_bounds = array<i64: 1, 64, 2>}]} {
    %c0_i32 = arith.constant 0 : i32
    %0 = arith.cmpi eq, %arg1, %c0_i32 : i32
    %1 = arith.extui %0 : i1 to i32
    %c0_i32_0 = arith.constant 0 : i32
    %2 = arith.cmpi ne, %1, %c0_i32_0 : i32
    scf.if %2 {
      %cst_11 = arith.constant 0.000000e+00 : f32
      %20 = vector.broadcast %cst_11 : f32 to vector<1x64x2xf32>
      %c0_12 = arith.constant 0 : index
      %c0_13 = arith.constant 0 : index
      %c0_14 = arith.constant 0 : index
      %21 = vector.load %arg7[%c0_12, %c0_13, %c0_14] : memref<1x64x2xf32, #tpu.memory_space<vmem>>, vector<1x64x2xf32>
      tpu.vector_store %arg7[%c0_12, %c0_13, %c0_14], %20 {strides = array<i32>} : memref<1x64x2xf32, #tpu.memory_space<vmem>>, vector<1x64x2xf32>,
    } else {
    }
    %c0 = arith.constant 0 : index
    %c0_1 = arith.constant 0 : index
    %c0_2 = arith.constant 0 : index
    %3 = vector.load %arg2[%c0, %c0_1, %c0_2] : memref<1x64x128xf32, #tpu.memory_space<vmem>>, vector<1x64x128xf32>
    %4 = vector.shape_cast %3 : vector<1x64x128xf32> to vector<64x128xf32>
    %cst = arith.constant dense<0.000000e+00> : vector<64xf32>
    %5 = vector.multi_reduction <add>, %4, %cst [1] : vector<64x128xf32> to vector<64xf32>
    %6 = vector.shape_cast %5 : vector<64xf32> to vector<64x1xf32>
    %7 = arith.mulf %4, %4 : vector<64x128xf32>
    %cst_3 = arith.constant dense<0.000000e+00> : vector<64xf32>
    %8 = vector.multi_reduction <add>, %7, %cst_3 [1] : vector<64x128xf32> to vector<64xf32>
    %9 = vector.shape_cast %8 : vector<64xf32> to vector<64x1xf32>
    %10 = tpu.concatenate %6, %9 in 1 : vector<64x1xf32>, vector<64x1xf32> -> vector<64x2xf32>
    %c0_4 = arith.constant 0 : index
    %c0_5 = arith.constant 0 : index
    %c0_6 = arith.constant 0 : index
    %11 = vector.load %arg7[%c0_4, %c0_5, %c0_6] : memref<1x64x2xf32, #tpu.memory_space<vmem>>, vector<1x64x2xf32>
    %12 = vector.shape_cast %11 : vector<1x64x2xf32> to vector<64x2xf32>
    %13 = arith.addf %12, %10 : vector<64x2xf32>
    %c0_7 = arith.constant 0 : index
    %c0_8 = arith.constant 0 : index
    %c0_9 = arith.constant 0 : index
    %14 = vector.load %arg7[%c0_7, %c0_8, %c0_9] : memref<1x64x2xf32, #tpu.memory_space<vmem>>, vector<1x64x2xf32>
    %15 = vector.shape_cast %14 : vector<1x64x2xf32> to vector<64x2xf32>
    %16 = vector.shape_cast %13 : vector<64x2xf32> to vector<1x64x2xf32>
    tpu.vector_store %arg7[%c0_7, %c0_8, %c0_9], %16 {strides = array<i32>} : memref<1x64x2xf32, #tpu.memory_space<vmem>>, vector<1x64x2xf32>,
    %c1_i32 = arith.constant 1 : i32
    %17 = arith.cmpi eq, %arg1, %c1_i32 : i32
    %18 = arith.extui %17 : i1 to i32
    %c0_i32_10 = arith.constant 0 : i32
    %19 = arith.cmpi ne, %18, %c0_i32_10 : i32
    scf.if %19 {
      %c0_11 = arith.constant 0 : index
      %c0_12 = arith.constant 0 : index
      %c0_13 = arith.constant 0 : index
      %20 = vector.load %arg7[%c0_11, %c0_12, %c0_13] : memref<1x64x2xf32, #tpu.memory_space<vmem>>, vector<1x64x2xf32>
      %21 = vector.shape_cast %20 : vector<1x64x2xf32> to vector<64x2xf32>
      %c0_14 = arith.constant 0 : index
      %c0_15 = arith.constant 0 : index
      %22 = vector.load %arg5[%c0_14, %c0_15] : memref<32x64xf32, #tpu.memory_space<vmem>>, vector<32x64xf32>
      %cst_16 = arith.constant dense<0.000000e+00> : vector<32x2xf32>
      %23 = tpu.matmul %22, %21, %cst_16 {dimension_numbers = #tpu.dot_dimension_numbers<[1], [0], [0], [1], [0, 0, 1, 1], [], []>} : vector<32x64xf32>, vector<64x2xf32>, vector<32x2xf32> -> vector<32x2xf32>
      %c0_17 = arith.constant 0 : index
      %c0_18 = arith.constant 0 : index
      %24 = vector.load %arg6[%c0_17, %c0_18] : memref<64x32xf32, #tpu.memory_space<vmem>>, vector<64x32xf32>
      %cst_19 = arith.constant dense<0.000000e+00> : vector<64x2xf32>
      %25 = tpu.matmul %24, %23, %cst_19 {dimension_numbers = #tpu.dot_dimension_numbers<[1], [0], [0], [1], [0, 0, 1, 1], [], []>} : vector<64x32xf32>, vector<32x2xf32>, vector<64x2xf32> -> vector<64x2xf32>
      %26 = vector.extract_strided_slice %25 {offsets = [0, 0], sizes = [64, 1], strides = [1, 1]} : vector<64x2xf32> to vector<64x1xf32>
      %cst_20 = arith.constant 0.001953125 : f32
      %27 = vector.broadcast %cst_20 : f32 to vector<64x1xf32>
      %28 = arith.mulf %26, %27 : vector<64x1xf32>
      %29 = vector.extract_strided_slice %25 {offsets = [0, 1], sizes = [64, 1], strides = [1, 1]} : vector<64x2xf32> to vector<64x1xf32>
      %cst_21 = arith.constant 0.001953125 : f32
      %30 = vector.broadcast %cst_21 : f32 to vector<64x1xf32>
      %31 = arith.mulf %29, %30 : vector<64x1xf32>
      %32 = arith.mulf %28, %28 : vector<64x1xf32>
      %33 = arith.subf %31, %32 : vector<64x1xf32>
      %cst_22 = arith.constant 9.99999997E-7 : f32
      %34 = vector.broadcast %cst_22 : f32 to vector<64x1xf32>
      %35 = arith.addf %33, %34 : vector<64x1xf32>
      %36 = math.rsqrt %35 : vector<64x1xf32>
      %c0_23 = arith.constant 0 : index
      %c0_24 = arith.constant 0 : index
      %37 = vector.load %arg3[%c0_23, %c0_24] : memref<64x1xf32, #tpu.memory_space<vmem>>, vector<64x1xf32>
      %38 = arith.mulf %37, %36 : vector<64x1xf32>
      %c0_25 = arith.constant 0 : index
      %c0_26 = arith.constant 0 : index
      %39 = vector.load %arg4[%c0_25, %c0_26] : memref<64x1xf32, #tpu.memory_space<vmem>>, vector<64x1xf32>
      %40 = arith.mulf %28, %38 : vector<64x1xf32>
      %41 = arith.subf %39, %40 : vector<64x1xf32>
      %42 = tpu.concatenate %38, %41 in 1 : vector<64x1xf32>, vector<64x1xf32> -> vector<64x2xf32>
      %c0_27 = arith.constant 0 : index
      %c0_28 = arith.constant 0 : index
      %c0_29 = arith.constant 0 : index
      %43 = vector.load %arg7[%c0_27, %c0_28, %c0_29] : memref<1x64x2xf32, #tpu.memory_space<vmem>>, vector<1x64x2xf32>
      %44 = vector.shape_cast %43 : vector<1x64x2xf32> to vector<64x2xf32>
      %45 = vector.shape_cast %42 : vector<64x2xf32> to vector<1x64x2xf32>
      tpu.vector_store %arg7[%c0_27, %c0_28, %c0_29], %45 {strides = array<i32>} : memref<1x64x2xf32, #tpu.memory_space<vmem>>, vector<1x64x2xf32>,
    } else {
    }
    return
  }
  func.func @transform_0(%arg0: i32, %arg1: i32) -> (i32, i32, i32) {
    %c0_i32 = arith.constant 0 : i32
    %c0_i32_0 = arith.constant 0 : i32
    return %arg0, %c0_i32, %arg1 : i32, i32, i32
  }
  func.func @transform_1(%arg0: i32, %arg1: i32) -> (i32, i32) {
    %c0_i32 = arith.constant 0 : i32
    %c0_i32_0 = arith.constant 0 : i32
    %c0_i32_1 = arith.constant 0 : i32
    return %c0_i32, %c0_i32_0 : i32, i32
  }
  func.func @transform_2(%arg0: i32, %arg1: i32) -> (i32, i32) {
    %c0_i32 = arith.constant 0 : i32
    %c0_i32_0 = arith.constant 0 : i32
    %c0_i32_1 = arith.constant 0 : i32
    return %c0_i32, %c0_i32_0 : i32, i32
  }
  func.func @transform_3(%arg0: i32, %arg1: i32) -> (i32, i32) {
    %c0_i32 = arith.constant 0 : i32
    %c0_i32_0 = arith.constant 0 : i32
    %c0_i32_1 = arith.constant 0 : i32
    return %c0_i32, %c0_i32_0 : i32, i32
  }
  func.func @transform_4(%arg0: i32, %arg1: i32) -> (i32, i32) {
    %c0_i32 = arith.constant 0 : i32
    %c0_i32_0 = arith.constant 0 : i32
    %c0_i32_1 = arith.constant 0 : i32
    return %c0_i32, %c0_i32_0 : i32, i32
  }
  func.func @transform_5(%arg0: i32, %arg1: i32) -> (i32, i32, i32) {
    %c0_i32 = arith.constant 0 : i32
    %c0_i32_0 = arith.constant 0 : i32
    %c0_i32_1 = arith.constant 0 : i32
    return %arg0, %c0_i32, %c0_i32_0 : i32, i32, i32
  }
}

</mosaic_0001>

<bundles_post_ra>
// kernel: tpu_custom_call.1
= control target key start
LH: loop header
LB: loop body
LE: loop exit
PB: predicated region body
PF: predicated region fallthrough
CT: control target
= control target key end

     0   :  { %10 = vsyncpa [#allocation3], 0  ;;  %s1622_s0 = inlined_call_operand.hbm [shape: f32[2,64,256], index: 0, kind: input, shape index: {}]   ;;  %s1623_s1 = inlined_call_operand.vmem [shape: f32[64,1], index: 1, kind: input, shape index: {}]   ;;  %s1624_s2 = inlined_call_operand.vmem [shape: f32[64,1], index: 2, kind: input, shape index: {}]   ;;  %s1625_s3 = inlined_call_operand.vmem [shape: f32[32,64], index: 3, kind: input, shape index: {}]   ;;  %s1626_s4 = inlined_call_operand.vmem [shape: f32[64,32], index: 4, kind: input, shape index: {}]   ;;  %s1627_s5 = inlined_call_operand.vmem [shape: f32[2,64,2], index: 5, kind: output, shape index: {}]  }
   0x1   :  { %12 = vsyncpa [#allocation3 + $0x1], 0  ;;  %s1225_s18 = smov 0   ;;  %s1227_s19 = smov 0  }
   0x2   :  { %s1229_s20 = smov 0   ;;  %s1231_s21 = smov 0  }
   0x3   :  { %s1233_s22 = smov 0   ;;  %s1235_s23 = smov 0  }
   0x4   :  { %s1237_s24 = smov 0   ;;  %s1239_s25 = smov 0  }
   0x5 LB: > { %s879_s26 = sadd.s32 4294967295, %s1186_s25   ;;  %s27_s27 = sadd.s32 1, %s1178_s23  ;;  %s1186_s25 = sphi %s1239_s25, %s18_s25   ;;  %s1182_s24 = sphi %s1237_s24, %s1641_s24   ;;  %s1178_s23 = sphi %s1235_s23, %s1640_s23   ;;  %s1174_s22 = sphi %s1233_s22, %s1639_s22   ;;  %s1170_s21 = sphi %s1231_s21, %s1638_s21   ;;  %s1166_s20 = sphi %s1229_s20, %s1637_s20   ;;  %s1162_s19 = sphi %s1227_s19, %s1636_s19   ;;  %s1158_s18 = sphi %s1225_s18, %s1635_s18  }
   0x6   : > { %p28_p0 = scmp.ge.s32.totalorder %s27_s27, 2  ;;  %s30_s28 = sadd.s32 1, %s1182_s24 }
   0x7   : > { %s39_s29 = sadd.s32 1, %s1166_s20  ;;  %p46_p1 = scmp.ne.s32.totalorder %s1166_s20, %s1162_s19 }
   0x8   : > { %s1643_s27 = smov (%p28_p0, %s27_s27), 0  ;;  %s1645_s28 = smov (!%p28_p0, %s30_s28), %s1182_s24 }
   0x9   : > { %1629 = sst [smem:[#allocation5_spill]] %s1643_s27  ;;  %s35_s30 = ssub.s32 %s1178_s23, %s1643_s27 }
   0xa   : > { %p47_p2 = scmp.eq.s32.totalorder %s1186_s25, 0  ;;  %p32_p3 = scmp.ge.s32.totalorder %s1645_s28, 2 }
   0xb   : > { %p52_p4 = scmp.ne.s32.totalorder %s1162_s19, %s1158_s18  ;;  %p53_p6 = scmp.eq.s32.totalorder %s879_s26, 0 }
   0xc   : > { %p1276_p5 = por %p47_p2, %p46_p1  ;;  %s1647_s28 = smov (%p32_p3, %s1645_s28), 0 }
   0xd   : > { %p1282_p7 = por %p53_p6, %p52_p4  ;;  %s34_s8 = ssub.s32 %s1182_s24, %s1647_s28 }
   0xe   : > { %p1003_p8 = scmp.lt.s32.totalorder %s1186_s25, 4  ;;  %s36_s9 = sor.u32 %s35_s30, %s34_s8 }
   0xf   : > { %s198_s10 = sand.u32 1, %s1166_s20   ;;  %p37_p9 = scmp.eq.s32.totalorder %s36_s9, 0 }
  0x10   : > { %s883_s11 = sshll.u32 %s198_s10, 6  ;;  %s884_s12 = sshll.u32 %s1182_s24, 4 }
  0x11   : > { %s1292_s13 = scalar_select %p37_p9, %s1166_s20, %s39_s29  }
  0x12   : > { %s207_s14 = sadd.s32 %s1178_s23, %s884_s12  ;;  %s202_s16 = scalar_lea.vmem [#allocation2], %s883_s11 }
  0x13   : > { %s885_s15 = sshll.u32 %s207_s14, 7  ;;  %s210_s17 = sshll.u32 %s202_s16, 4  ;;  %s1300_s17 = int_to_ptr.vmem [resolvable:$true] %s210_s17 }
  0x14   : > { %s1298_s27 = scalar_lea.hbm %s1622_s0, %s885_s15  ;;  %p1306_p10 = pnand %p1003_p8, %p1276_p5 }
  0x15   : > { %s1311_s30 = scalar_lea.sflag [#allocation3], %s198_s10  ;;  %s1090_s8 = scalar_lea.hbm %s1298_s27, 1024 }
  0x16   : > { %p1091_p12 = scmp.ne.s32.totalorder %s1298_s27, %s1090_s8  ;;  %p1092_p13 = pneg %p1306_p10 }
  0x17   : > { %s1095_s11 = scalar_lea.hbm %s1622_s0, 4096  ;;  %p1096_p2 = scmp.lt.u32.totalorder %s1298_s27, %s1622_s0 }
  0x18   : > { %p1093_p0 = pnand %p1092_p13, %p1091_p12  ;;  %p1097_p3 = scmp.lt.u32.totalorder %s1095_s11, %s1090_s8 }
  0x19   : > { %p1099_p5 = scmp.lt.u32.totalorder %s1090_s8, %s1298_s27 }
  0x1a   : > { %p1094_p1 = pneg %p1093_p0  ;;  %p1098_p4 = por %p1097_p3, %p1096_p2 }
  0x1c   : > { %p1100_p6 = por %p1099_p5, %p1098_p4 }
  0x1e   : > { %p1101_p8 = pnand %p1100_p6, %p1094_p1 }
  0x20   : > { %1104 = shalt.err (!%p1101_p8)
}
  0x21   : > { %s1105_s10 = scalar_lea.vmem %s1300_s17, 1024  ;;  %s1188_s15 = smov [#allocation2]  }
  0x22   : > { %p1106_p9 = scmp.ne.s32.totalorder %s1300_s17, %s1105_s10  ;;  %s1110_s16 = sshll.u32 %s1188_s15, 4  ;;  %s1111_s16 = int_to_ptr.vmem [resolvable:$false] %s1110_s16 }
  0x23   : > { %s1112_s18 = scalar_lea.vmem %s1111_s16, 2048  ;;  %p1113_p11 = scmp.lt.s32.totalorder %s1300_s17, %s1111_s16 }
  0x24   : > { %p1108_p12 = pnand %p1106_p9, %p1092_p13  ;;  %p1114_p2 = scmp.lt.s32.totalorder %s1112_s18, %s1105_s10 }
  0x26   : > { %p1109_p0 = pneg %p1108_p12  ;;  %p1115_p3 = por %p1114_p2, %p1113_p11 }
  0x28   : > { %p1116_p4 = pnand %p1115_p3, %p1109_p0 }
  0x2a   : > { %1119 = shalt.err (!%p1116_p4)
}
  0x2b   : > { %s1189_s26 = smov 256   ;;  %s1190_s8 = smov 128  }
  0x2c   : > { %s1191_s9 = smov 8   ;;  %p218_p13 = scmp.lt.s32.totalorder %s1186_s25, 5 }
  0x2d   : > { %1002 = dma.hbm_to_vmem [thread:$0]  (!%p1306_p10), %s1298_s27, 1024, %s1300_s17, %s1311_s30, %s1189_s26, %s1190_s8, %s1191_s9  }
  0x2e   : > { %p1633_p1 = scmp.ge.s32.totalorder %s1186_s25, 1 }
  0x30   : > { %p219_p5 = pnand %p1633_p1, %p218_p13 }
  0x31   : > { %s224_s6 = sand.u32 (!%p219_p5), 1, %s1162_s19  }
  0x32   : > { %222 = sbr.rel (%p219_p5) target bundleno = 1078 (0x436), region = 40  ;;  %s887_s11 = sshll.u32 (!%p219_p5), %s224_s6, 6 }
  0x33   : > { %s225_s12 = scalar_lea.sflag (!%p219_p5), [#allocation3], %s224_s6  ;;  %s1343_s14 = scalar_lea.vmem (!%p219_p5), [#allocation2], %s887_s11 }
  0x39   : > { %1153 = dma.done.wait (%p1282_p7), %s225_s12, 1024  }
  0x3a   : > { %1155 = vsyncadd (%p1282_p7), %s225_s12, 4294966272  ;;  %p255_p11 = scmp.lt.s32.totalorder %s1174_s22, 1  ;;  %p890_p10 = scmp.ne.s32.totalorder %s1170_s21, 0 }
  0x3b   : > { %vm264_vm0 = vcmask (!%p890_p10), 15360   ;;  %v1192_v0 = vmov (!%p890_p10), 0.0  }
  0x3c   : > { %s1649_s22 = smov (!%p255_p11, %s1174_s22), 1  ;;  %263 = sbr.rel (%p890_p10) target bundleno = 67 (0x43), region = 48 }
  0x3d   : > { %s906_s27 = sshll.u32 %s1649_s22, 6 }
  0x3e   : > { %s1354_s30 = scalar_lea.vmem %s1627_s5, %s906_s27 }
  0x3f   : > { %265 = vst.msk [vmem:[%s1354_s30] sm:$0xff] (!%p890_p10), %vm264_vm0, %v1192_v0  ;;  %266 = vst.msk [vmem:[%s1354_s30 + $0x8] sm:$0xff] (!%p890_p10), %vm264_vm0, %v1192_v0 }
  0x40   : > { %267 = vst.msk [vmem:[%s1354_s30 + $0x10] sm:$0xff] (!%p890_p10), %vm264_vm0, %v1192_v0  ;;  %268 = vst.msk [vmem:[%s1354_s30 + $0x18] sm:$0xff] (!%p890_p10), %vm264_vm0, %v1192_v0 }
  0x41   : > { %269 = vst.msk [vmem:[%s1354_s30 + $0x20] sm:$0xff] (!%p890_p10), %vm264_vm0, %v1192_v0  ;;  %270 = vst.msk [vmem:[%s1354_s30 + $0x28] sm:$0xff] (!%p890_p10), %vm264_vm0, %v1192_v0 }
  0x42   : > { %271 = vst.msk [vmem:[%s1354_s30 + $0x30] sm:$0xff] (!%p890_p10), %vm264_vm0, %v1192_v0  ;;  %272 = vst.msk [vmem:[%s1354_s30 + $0x38] sm:$0xff] (!%p890_p10), %vm264_vm0, %v1192_v0 }
  0x43 PF: > { %v275_v1 = vld [vmem:[%s1343_s14 + $0x10] sm:$0xff]  ;;  %v273_v2 = vld [vmem:[%s1343_s14] sm:$0xff]  ;;  %v276_v3 = vld [vmem:[%s1343_s14 + $0x18] sm:$0xff]  ;;  %vm321_vm1 = vcmask 7168   ;;  %vm346_vm2 = vcmask 15360   ;;  %p891_p7 = scmp.ne.s32.totalorder %s1170_s21, 1 }
  0x44   : > { %285 = vadd.xlane.f32.xlu1 %v275_v1  ;;  %281 = vadd.xlane.f32.xlu0 %v273_v2  ;;  %v274_v4 = vld [vmem:[%s1343_s14 + $0x8] sm:$0xff]  ;;  %v277_v6 = vld [vmem:[%s1343_s14 + $0x20] sm:$0xff]  ;;  %v280_v7 = vld [vmem:[%s1343_s14 + $0x38] sm:$0xff]  ;;  %v297_v10 = vmul.f32 %v273_v2, %v273_v2  ;;  %v300_v11 = vmul.f32 %v276_v3, %v276_v3  ;;  %v299_v12 = vmul.f32 %v275_v1, %v275_v1  ;;  %vm371_vm3 = vcmask (!%p891_p7), 523264   ;;  %s1193_s26 = smov (!%p891_p7), 1   ;;  %s1194_s8 = smov (!%p891_p7), 127  }
  0x45   : > { %v278_v5 = vld [vmem:[%s1343_s14 + $0x28] sm:$0xff]  ;;  %v279_v8 = vld [vmem:[%s1343_s14 + $0x30] sm:$0xff]  ;;  %v298_v9 = vmul.f32 %v274_v4, %v274_v4  ;;  %v301_v14 = vmul.f32 %v277_v6, %v277_v6  ;;  %v304_v15 = vmul.f32 %v280_v7, %v280_v7  ;;  %v367_v1 = vld [vmem:[%s1625_s3] sm:$0xff] (!%p891_p7)  ;;  %vm477_vm4 = vcmask (!%p891_p7), 261120  }
  0x46   : > { %v302_v13 = vmul.f32 %v278_v5, %v278_v5  ;;  %v303_v16 = vmul.f32 %v279_v8, %v279_v8  ;;  %v331_v25 = vld [vmem:[%s1354_s30 + $0x8] sm:$0xff]  ;;  %v330_v26 = vld [vmem:[%s1354_s30] sm:$0xff]  ;;  %947 = vmatprep.mubr.msk.f32.mxu0 (!%p891_p7), %vm371_vm3, %v367_v1 }
  0x47   : > { %v333_v33 = vld [vmem:[%s1354_s30 + $0x18] sm:$0xff]  ;;  %v332_v34 = vld [vmem:[%s1354_s30 + $0x10] sm:$0xff] }
  0x48   : > { %287 = vadd.xlane.f32.xlu1 %v276_v3  ;;  %283 = vadd.xlane.f32.xlu0 %v274_v4  ;;  %v335_v41 = vld [vmem:[%s1354_s30 + $0x28] sm:$0xff]  ;;  %v334_v42 = vld [vmem:[%s1354_s30 + $0x20] sm:$0xff] }
  0x49   : > { %v337_v49 = vld [vmem:[%s1354_s30 + $0x38] sm:$0xff]  ;;  %v336_v50 = vld [vmem:[%s1354_s30 + $0x30] sm:$0xff] }
  0x4c   : > { %291 = vadd.xlane.f32.xlu1 %v278_v5  ;;  %289 = vadd.xlane.f32.xlu0 %v277_v6  ;;  %v368_v6 = vld [vmem:[%s1625_s3 + $0x8] sm:$0xff] (!%p891_p7) }
  0x50   : > { %295 = vadd.xlane.f32.xlu1 %v280_v7  ;;  %293 = vadd.xlane.f32.xlu0 %v279_v8  ;;  %v369_v7 = vld [vmem:[%s1625_s3 + $0x10] sm:$0xff] (!%p891_p7)  ;;  %v370_v8 = vld [vmem:[%s1625_s3 + $0x18] sm:$0xff] (!%p891_p7) }
  0x54   : > { %307 = vadd.xlane.f32.xlu1 %v298_v9  ;;  %305 = vadd.xlane.f32.xlu0 %v297_v10  ;;  %v469_v9 = vld [vmem:[%s1626_s4] sm:$0xff] (!%p891_p7) }
  0x55   : > { %961 = vmatprep.mubr.msk.f32.mxu1 (!%p891_p7), %vm477_vm4, %v469_v9 }
  0x58   : > { %311 = vadd.xlane.f32.xlu1 %v300_v11  ;;  %309 = vadd.xlane.f32.xlu0 %v299_v12 }
  0x5c   : > { %315 = vadd.xlane.f32.xlu1 %v302_v13  ;;  %313 = vadd.xlane.f32.xlu0 %v301_v14 }
  0x60   : > { %319 = vadd.xlane.f32.xlu1 %v304_v15  ;;  %317 = vadd.xlane.f32.xlu0 %v303_v16  ;;  %v470_v16 = vld [vmem:[%s1626_s4 + $0x8] sm:$0xff] (!%p891_p7) }
  0xd1   : > { %v286_v17 = vpop.xlane.xlu1 %285  ;;  %v282_v18 = vpop.xlane.xlu0 %281 }
  0xd5   : > { %v288_v19 = vpop.xlane.xlu1 %287  ;;  %v284_v20 = vpop.xlane.xlu0 %283 }
  0xd9   : > { %v292_v21 = vpop.xlane.xlu1 %291  ;;  %v290_v22 = vpop.xlane.xlu0 %289 }
  0xdd   : > { %v296_v23 = vpop.xlane.xlu1 %295  ;;  %v294_v24 = vpop.xlane.xlu0 %293 }
  0xe1   : > { %v308_v27 = vpop.xlane.xlu1 %307  ;;  %v306_v28 = vpop.xlane.xlu0 %305 }
  0xe2   : > { %v323_v29 = vsel %vm321_vm1, %v284_v20, %v308_v27  ;;  %v322_v30 = vsel %vm321_vm1, %v282_v18, %v306_v28  ;;  %v472_v18 = vld [vmem:[%s1626_s4 + $0x18] sm:$0xff] (!%p891_p7)  ;;  %v474_v20 = vld [vmem:[%s1626_s4 + $0x28] sm:$0xff] (!%p891_p7) }
  0xe3   : > { %v339_v31 = vadd.f32 %v331_v25, %v323_v29  ;;  %v338_v32 = vadd.f32 %v330_v26, %v322_v30 }
  0xe5   : > { %348 = vst.msk [vmem:[%s1354_s30 + $0x8] sm:$0xff] %vm346_vm2, %v339_v31  ;;  %347 = vst.msk [vmem:[%s1354_s30] sm:$0xff] %vm346_vm2, %v338_v32  ;;  %v312_v35 = vpop.xlane.xlu1 %311  ;;  %v310_v36 = vpop.xlane.xlu0 %309 }
  0xe6   : > { %v325_v37 = vsel %vm321_vm1, %v288_v19, %v312_v35  ;;  %v324_v38 = vsel %vm321_vm1, %v286_v17, %v310_v36  ;;  %v471_v17 = vld [vmem:[%s1626_s4 + $0x10] sm:$0xff] (!%p891_p7)  ;;  %v473_v19 = vld [vmem:[%s1626_s4 + $0x20] sm:$0xff] (!%p891_p7) }
  0xe7   : > { %v341_v39 = vadd.f32 %v333_v33, %v325_v37  ;;  %v340_v40 = vadd.f32 %v332_v34, %v324_v38 }
  0xe9   : > { %350 = vst.msk [vmem:[%s1354_s30 + $0x18] sm:$0xff] %vm346_vm2, %v341_v39  ;;  %349 = vst.msk [vmem:[%s1354_s30 + $0x10] sm:$0xff] %vm346_vm2, %v340_v40  ;;  %v316_v43 = vpop.xlane.xlu1 %315  ;;  %v314_v44 = vpop.xlane.xlu0 %313 }
  0xea   : > { %v327_v45 = vsel %vm321_vm1, %v292_v21, %v316_v43  ;;  %v326_v46 = vsel %vm321_vm1, %v290_v22, %v314_v44  ;;  %v475_v21 = vld [vmem:[%s1626_s4 + $0x30] sm:$0xff] (!%p891_p7)  ;;  %v476_v22 = vld [vmem:[%s1626_s4 + $0x38] sm:$0xff] (!%p891_p7) }
  0xeb   : > { %v343_v47 = vadd.f32 %v335_v41, %v327_v45  ;;  %v342_v48 = vadd.f32 %v334_v42, %v326_v46  ;;  %358 = sbr.rel (%p891_p7) target bundleno = 1078 (0x436), region = 52 }
  0xec   : > { %v359_v57 = vld [vmem:[%s1354_s30] sm:$0xff] (!%p891_p7)  ;;  %v360_v58 = vld [vmem:[%s1354_s30 + $0x8] sm:$0xff] (!%p891_p7) }
  0xed   : > { %352 = vst.msk [vmem:[%s1354_s30 + $0x28] sm:$0xff] %vm346_vm2, %v343_v47  ;;  %351 = vst.msk [vmem:[%s1354_s30 + $0x20] sm:$0xff] %vm346_vm2, %v342_v48  ;;  %v320_v51 = vpop.xlane.xlu1 %319  ;;  %v318_v52 = vpop.xlane.xlu0 %317  ;;  %v973_v60 = vpack.c.bf16 (!%p891_p7), %v360_v58, %v359_v57 }
  0xee   : > { %v329_v53 = vsel %vm321_vm1, %v296_v23, %v320_v51  ;;  %v328_v54 = vsel %vm321_vm1, %v294_v24, %v318_v52 }
  0xef   : > { %v345_v55 = vadd.f32 %v337_v49, %v329_v53  ;;  %v344_v56 = vadd.f32 %v336_v50, %v328_v54  ;;  %974 = vmatprep.subr.bf16.mxu0 (!%p891_p7), %v973_v60 }
  0xf0   : > { %v361_v59 = vld [vmem:[%s1354_s30 + $0x10] sm:$0xff] (!%p891_p7)  ;;  %v362_v61 = vld [vmem:[%s1354_s30 + $0x18] sm:$0xff] (!%p891_p7)  ;;  %976 = vmatpush3.bf16.msra.mxu0 (!%p891_p7), %v973_v60 }
  0xf1   : > { %354 = vst.msk [vmem:[%s1354_s30 + $0x38] sm:$0xff] %vm346_vm2, %v345_v55  ;;  %353 = vst.msk [vmem:[%s1354_s30 + $0x30] sm:$0xff] %vm346_vm2, %v344_v56  ;;  %v977_v62 = vpack.c.bf16 (!%p891_p7), %v362_v61, %v361_v59 }
  0xf3   : > { %978 = vmatprep.subr.bf16.mxu0 %v977_v62 }
  0xf4   : > { %v363_v63 = vld [vmem:[%s1354_s30 + $0x20] sm:$0xff]  ;;  %v364_v0 = vld [vmem:[%s1354_s30 + $0x28] sm:$0xff]  ;;  %980 = vmatpush3.bf16.msra.mxu0 %v977_v62 }
  0xf5   : > { %v981_v2 = vpack.c.bf16 %v364_v0, %v363_v63 }
  0xf7   : > { %982 = vmatprep.subr.bf16.mxu0 %v981_v2 }
  0xf8   : > { %v365_v3 = vld [vmem:[%s1354_s30 + $0x30] sm:$0xff]  ;;  %v366_v4 = vld [vmem:[%s1354_s30 + $0x38] sm:$0xff]  ;;  %984 = vmatpush3.bf16.msra.mxu0 %v981_v2 }
  0xf9   : > { %v985_v5 = vpack.c.bf16 %v366_v4, %v365_v3 }
  0xfb   : > { %986 = vmatprep.subr.bf16.mxu0 %v985_v5 }
  0xfc   : > { %988 = vmatpush3.bf16.msra.mxu0 %v985_v5 }
  0xff   : > { %948 = vmatmul.mubr.msk.f32.vlgmr.msra.gmra.mrb[0].mxu0 %vm371_vm3, %v368_v6 }
 0x100   : > { %950 = vmatprep.mubr.msk.f32.mxu0 %vm371_vm3, %v369_v7 }
 0x103   : > { %951 = vmatmul.mubr.msk.f32.gmra.mrb[2].mxu0 %vm371_vm3, %v370_v8 }
 0x1d2   : > { %v949_v10 = vpop.f32.mrb[0].mxu0 }
 0x1d3   : > { %v450_v11 = vpop.f32.mrb[1].mxu0 }
 0x1d4   : > { %v989_v12 = vpack.c.bf16 %v949_v10, %v450_v11 }
 0x1d6   : > { %v952_v13 = vpop.f32.mrb[2].mxu0  ;;  %990 = vmatprep.subr.bf16.mxu1 %v989_v12 }
 0x1d7   : > { %v460_v14 = vpop.f32.mrb[3].mxu0  ;;  %992 = vmatpush3.bf16.msra.mxu1 %v989_v12 }
 0x1d8   : > { %v993_v15 = vpack.c.bf16 %v952_v13, %v460_v14 }
 0x1da   : > { %994 = vmatprep.subr.bf16.mxu1 %v993_v15 }
 0x1db   : > { %996 = vmatpush3.bf16.msra.mxu1 %v993_v15  ;;  %v680_v15 = vld [vmem:[%s1623_s1 + $0x8] sm:$0xff] }
 0x1de   : > { %962 = vmatmul.mubr.msk.f32.vlgmr.msra.gmra.mrb[0].mxu1 %vm477_vm4, %v470_v16 }
 0x1df   : > { %964 = vmatprep.mubr.msk.f32.mxu1 %vm477_vm4, %v471_v17 }
 0x1e2   : > { %965 = vmatmul.mubr.msk.f32.gmra.mrb[2].mxu1 %vm477_vm4, %v472_v18  ;;  %v679_v18 = vld [vmem:[%s1623_s1] sm:$0xff] }
 0x1e3   : > { %967 = vmatprep.mubr.msk.f32.mxu1 %vm477_vm4, %v473_v19  ;;  %v728_v19 = vld [vmem:[%s1624_s2 + $0x8] sm:$0xff] }
 0x1e6   : > { %968 = vmatmul.mubr.msk.f32.gmra.mrb[4].mxu1 %vm477_vm4, %v474_v20 }
 0x1e7   : > { %970 = vmatprep.mubr.msk.f32.mxu1 %vm477_vm4, %v475_v21  ;;  %v682_v21 = vld [vmem:[%s1623_s1 + $0x18] sm:$0xff] }
 0x1ea   : > { %971 = vmatmul.mubr.msk.f32.gmra.mrb[6].mxu1 %vm477_vm4, %v476_v22 }
 0x2b1   : > { %v963_v23 = vpop.f32.mrb[0].mxu1 }
 0x2b2   : > { %v1462_v24 = vmul.f32 0.001953125, %v963_v23  ;;  %v568_v25 = vpop.f32.mrb[1].mxu1 }
 0x2b3   : > { %v1464_v26 = vmul.f32 0.001953125, %v568_v25 }
 0x2b4   : > { %v616_v27 = vmul.f32 %v1462_v24, %v1462_v24 }
 0x2b5   : > { %v966_v28 = vpop.f32.mrb[2].mxu1  ;;  %v615_v32 = vmul.f32 %v1464_v26, %v1464_v26 }
 0x2b6   : > { %v1468_v29 = vmul.f32 0.001953125, %v966_v28  ;;  %633 = vrot.lane.b32.xlu0 %v616_v27, %s1193_s26  ;;  %v578_v30 = vpop.f32.mrb[3].mxu1 }
 0x2b7   : > { %v1471_v31 = vmul.f32 0.001953125, %v578_v30  ;;  %v681_v30 = vld [vmem:[%s1623_s1 + $0x10] sm:$0xff] }
 0x2b8   : > { %v618_v33 = vmul.f32 %v1468_v29, %v1468_v29 }
 0x2b9   : > { %v969_v34 = vpop.f32.mrb[4].mxu1  ;;  %v617_v38 = vmul.f32 %v1471_v31, %v1471_v31 }
 0x2ba   : > { %v1477_v35 = vmul.f32 0.001953125, %v969_v34  ;;  %631 = vrot.lane.b32.xlu0 %v615_v32, %s1193_s26  ;;  %637 = vrot.lane.b32.xlu1 %v618_v33, %s1193_s26  ;;  %v588_v36 = vpop.f32.mrb[5].mxu1  ;;  %v727_v32 = vld [vmem:[%s1624_s2] sm:$0xff] }
 0x2bb   : > { %v1481_v37 = vmul.f32 0.001953125, %v588_v36 }
 0x2bc   : > { %v620_v43 = vmul.f32 %v1477_v35, %v1477_v35 }
 0x2bd   : > { %v972_v39 = vpop.f32.mrb[6].mxu1  ;;  %v619_v40 = vmul.f32 %v1481_v37, %v1481_v37 }
 0x2be   : > { %v1487_v41 = vmul.f32 0.001953125, %v972_v39  ;;  %635 = vrot.lane.b32.xlu1 %v617_v38, %s1193_s26  ;;  %v598_v42 = vpop.f32.mrb[7].mxu1 }
 0x2bf   : > { %v1492_v44 = vmul.f32 0.001953125, %v598_v42  ;;  %639 = vrot.lane.b32.xlu0 %v619_v40, %s1193_s26  ;;  %v684_v42 = vld [vmem:[%s1623_s1 + $0x28] sm:$0xff] }
 0x2c0   : > { %v622_v46 = vmul.f32 %v1487_v41, %v1487_v41 }
 0x2c1   : > { %v621_v45 = vmul.f32 %v1492_v44, %v1492_v44 }
 0x2c2   : > { %641 = vrot.lane.b32.xlu1 %v620_v43, %s1193_s26  ;;  %v729_v43 = vld [vmem:[%s1624_s2 + $0x10] sm:$0xff] }
 0x2c3   : > { %643 = vrot.lane.b32.xlu0 %v621_v45, %s1193_s26 }
 0x2c6   : > { %645 = vrot.lane.b32.xlu1 %v622_v46, %s1193_s26 }
 0x328   : > { %v634_v47 = vpop.permute.xlu0 %633 }
 0x329   : > { %v656_v48 = vsub.f32 %v1462_v24, %v634_v47 }
 0x32b   : > { %v664_v49 = vadd.f32 1e-06, %v656_v48 }
 0x32c   : > { %v632_v50 = vpop.permute.xlu0 %631  ;;  %v638_v51 = vpop.permute.xlu1 %637 }
 0x32d   : > { %1074 = vrsqrt.f32 %v664_v49  ;;  %v655_v52 = vsub.f32 %v1464_v26, %v632_v50  ;;  %v658_v53 = vsub.f32 %v1468_v29, %v638_v51  ;;  %v686_v50 = vld [vmem:[%s1623_s1 + $0x38] sm:$0xff]  ;;  %v685_v51 = vld [vmem:[%s1623_s1 + $0x30] sm:$0xff] }
 0x32f   : > { %v663_v54 = vadd.f32 1e-06, %v655_v52  ;;  %v666_v55 = vadd.f32 1e-06, %v658_v53  ;;  %v731_v52 = vld [vmem:[%s1624_s2 + $0x20] sm:$0xff] }
 0x330   : > { %v636_v56 = vpop.permute.xlu1 %635 }
 0x331   : > { %1076 = vrsqrt.f32 %v663_v54  ;;  %v657_v57 = vsub.f32 %v1471_v31, %v636_v56  ;;  %v640_v58 = vpop.permute.xlu0 %639 }
 0x332   : > { %1078 = vrsqrt.f32 %v666_v55  ;;  %v659_v59 = vsub.f32 %v1481_v37, %v640_v58 }
 0x333   : > { %v665_v60 = vadd.f32 1e-06, %v657_v57 }
 0x334   : > { %v667_v61 = vadd.f32 1e-06, %v659_v59  ;;  %v642_v62 = vpop.permute.xlu1 %641 }
 0x335   : > { %1080 = vrsqrt.f32 %v665_v60  ;;  %v660_v63 = vsub.f32 %v1477_v35, %v642_v62  ;;  %v644_v0 = vpop.permute.xlu0 %643  ;;  %v733_v62 = vld [vmem:[%s1624_s2 + $0x30] sm:$0xff] }
 0x336   : > { %v661_v1 = vsub.f32 %v1492_v44, %v644_v0  ;;  %1082 = vrsqrt.f32 %v667_v61  ;;  %v734_v61 = vld [vmem:[%s1624_s2 + $0x38] sm:$0xff] }
 0x337   : > { %v1075_v2 = vpop.eup %1074  ;;  %v668_v3 = vadd.f32 1e-06, %v660_v63 }
 0x338   : > { %v669_v4 = vadd.f32 1e-06, %v661_v1  ;;  %697 = vrot.lane.b32.xlu1 %v1075_v2, %s1194_s8  ;;  %v646_v5 = vpop.permute.xlu1 %645 }
 0x339   : > { %1084 = vrsqrt.f32 %v668_v3  ;;  %v662_v6 = vsub.f32 %v1487_v41, %v646_v5 }
 0x33a   : > { %1086 = vrsqrt.f32 %v669_v4 }
 0x33b   : > { %v1077_v7 = vpop.eup %1076  ;;  %v670_v8 = vadd.f32 1e-06, %v662_v6 }
 0x33c   : > { %v1079_v9 = vpop.eup %1078  ;;  %695 = vrot.lane.b32.xlu0 %v1077_v7, %s1194_s8 }
 0x33d   : > { %1088 = vrsqrt.f32 %v670_v8  ;;  %701 = vrot.lane.b32.xlu1 %v1079_v9, %s1194_s8 }
 0x33f   : > { %v1081_v10 = vpop.eup %1080 }
 0x340   : > { %699 = vrot.lane.b32.xlu0 %v1081_v10, %s1194_s8  ;;  %v1083_v11 = vpop.eup %1082 }
 0x343   : > { %v1085_v12 = vpop.eup %1084 }
 0x344   : > { %705 = vrot.lane.b32.xlu1 %v1085_v12, %s1194_s8  ;;  %703 = vrot.lane.b32.xlu0 %v1083_v11, %s1194_s8  ;;  %v1087_v13 = vpop.eup %1086 }
 0x347   : > { %v1089_v14 = vpop.eup %1088 }
 0x348   : > { %709 = vrot.lane.b32.xlu1 %v1089_v14, %s1194_s8  ;;  %707 = vrot.lane.b32.xlu0 %v1087_v13, %s1194_s8 }
 0x3aa   : > { %v698_v16 = vpop.permute.xlu1 %697 }
 0x3ab   : > { %v720_v17 = vmul.f32 %v698_v16, %v680_v15 }
 0x3ad   : > { %v736_v20 = vmul.f32 %v720_v17, %v1462_v24  ;;  %v730_v24 = vld [vmem:[%s1624_s2 + $0x18] sm:$0xff] }
 0x3ae   : > { %v696_v22 = vpop.permute.xlu0 %695 }
 0x3af   : > { %v702_v23 = vpop.permute.xlu1 %701  ;;  %v719_v25 = vmul.f32 %v696_v22, %v679_v18  ;;  %v744_v27 = vsub.f32 %v728_v19, %v736_v20 }
 0x3b0   : > { %v722_v28 = vmul.f32 %v702_v23, %v682_v21 }
 0x3b1   : > { %v735_v33 = vmul.f32 %v719_v25, %v1464_v26  ;;  %761 = vrot.lane.b32.xlu1 %v744_v27, %s1193_s26  ;;  %v683_v26 = vld [vmem:[%s1623_s1 + $0x20] sm:$0xff] }
 0x3b2   : > { %v738_v34 = vmul.f32 %v722_v28, %v1468_v29  ;;  %v700_v36 = vpop.permute.xlu0 %699 }
 0x3b3   : > { %v721_v38 = vmul.f32 %v700_v36, %v681_v30  ;;  %v743_v39 = vsub.f32 %v727_v32, %v735_v33 }
 0x3b4   : > { %v746_v40 = vsub.f32 %v730_v24, %v738_v34 }
 0x3b5   : > { %v737_v45 = vmul.f32 %v721_v38, %v1471_v31  ;;  %759 = vrot.lane.b32.xlu0 %v743_v39, %s1193_s26  ;;  %v732_v31 = vld [vmem:[%s1624_s2 + $0x28] sm:$0xff] }
 0x3b6   : > { %765 = vrot.lane.b32.xlu1 %v746_v40, %s1193_s26  ;;  %v706_v29 = vpop.permute.xlu1 %705  ;;  %v704_v46 = vpop.permute.xlu0 %703 }
 0x3b7   : > { %v724_v47 = vmul.f32 %v706_v29, %v684_v42  ;;  %v723_v48 = vmul.f32 %v704_v46, %v683_v26  ;;  %v745_v49 = vsub.f32 %v729_v43, %v737_v45 }
 0x3b9   : > { %v740_v53 = vmul.f32 %v724_v47, %v1477_v35  ;;  %v739_v54 = vmul.f32 %v723_v48, %v1481_v37  ;;  %763 = vrot.lane.b32.xlu0 %v745_v49, %s1193_s26 }
 0x3ba   : > { %v710_v55 = vpop.permute.xlu1 %709  ;;  %v708_v56 = vpop.permute.xlu0 %707 }
 0x3bb   : > { %v726_v57 = vmul.f32 %v710_v55, %v686_v50  ;;  %v725_v58 = vmul.f32 %v708_v56, %v685_v51  ;;  %v748_v59 = vsub.f32 %v732_v31, %v740_v53  ;;  %v747_v60 = vsub.f32 %v731_v52, %v739_v54 }
 0x3bd   : > { %v742_v35 = vmul.f32 %v726_v57, %v1487_v41  ;;  %v741_v37 = vmul.f32 %v725_v58, %v1492_v44  ;;  %769 = vrot.lane.b32.xlu1 %v748_v59, %s1193_s26  ;;  %767 = vrot.lane.b32.xlu0 %v747_v60, %s1193_s26 }
 0x3bf   : > { %v750_v63 = vsub.f32 %v734_v61, %v742_v35  ;;  %v749_v0 = vsub.f32 %v733_v62, %v741_v37 }
 0x3c1   : > { %773 = vrot.lane.b32.xlu1 %v750_v63, %s1193_s26  ;;  %771 = vrot.lane.b32.xlu0 %v749_v0, %s1193_s26 }
 0x423   : > { %v762_v1 = vpop.permute.xlu1 %761 }
 0x424   : > { %v784_v2 = vsel %vm321_vm1, %v720_v17, %v762_v1 }
 0x425   : > { %792 = vst.msk [vmem:[%s1354_s30 + $0x8] sm:$0xff] %vm346_vm2, %v784_v2 }
 0x427   : > { %v760_v41 = vpop.permute.xlu0 %759 }
 0x428   : > { %v766_v44 = vpop.permute.xlu1 %765  ;;  %v783_v3 = vsel %vm321_vm1, %v719_v25, %v760_v41 }
 0x429   : > { %v786_v4 = vsel %vm321_vm1, %v722_v28, %v766_v44  ;;  %791 = vst.msk [vmem:[%s1354_s30] sm:$0xff] %vm346_vm2, %v783_v3 }
 0x42a   : > { %794 = vst.msk [vmem:[%s1354_s30 + $0x18] sm:$0xff] %vm346_vm2, %v786_v4 }
 0x42b   : > { %v764_v5 = vpop.permute.xlu0 %763 }
 0x42c   : > { %v785_v6 = vsel %vm321_vm1, %v721_v38, %v764_v5 }
 0x42d   : > { %793 = vst.msk [vmem:[%s1354_s30 + $0x10] sm:$0xff] %vm346_vm2, %v785_v6 }
 0x42f   : > { %v770_v7 = vpop.permute.xlu1 %769  ;;  %v768_v8 = vpop.permute.xlu0 %767 }
 0x430   : > { %v788_v9 = vsel %vm321_vm1, %v724_v47, %v770_v7  ;;  %v787_v10 = vsel %vm321_vm1, %v723_v48, %v768_v8 }
 0x431   : > { %796 = vst.msk [vmem:[%s1354_s30 + $0x28] sm:$0xff] %vm346_vm2, %v788_v9  ;;  %795 = vst.msk [vmem:[%s1354_s30 + $0x20] sm:$0xff] %vm346_vm2, %v787_v10 }
 0x433   : > { %v774_v11 = vpop.permute.xlu1 %773  ;;  %v772_v12 = vpop.permute.xlu0 %771 }
 0x434   : > { %v790_v13 = vsel %vm321_vm1, %v726_v57, %v774_v11  ;;  %v789_v14 = vsel %vm321_vm1, %v725_v58, %v772_v12 }
 0x435   : > { %798 = vst.msk [vmem:[%s1354_s30 + $0x38] sm:$0xff] %vm346_vm2, %v790_v13  ;;  %797 = vst.msk [vmem:[%s1354_s30 + $0x30] sm:$0xff] %vm346_vm2, %v789_v14 }
 0x436 PF: > { %s18_s25 = sadd.s32 1, %s1186_s25   ;;  %s1634_s26 = sld [smem:[#allocation5_spill]] }
 0x437   : > { %p15_p6 = scmp.ge.s32.totalorder %s18_s25, 6   ;;  %s1635_s18 = smov %s1162_s19 }
 0x438   : > { %s1636_s19 = smov %s1166_s20  ;;  %s1637_s20 = smov %s1292_s13 }
 0x439   : > { %s1638_s21 = smov %s1178_s23  ;;  %s1639_s22 = smov %s1182_s24 }
 0x43a   : > { %s1641_s24 = smov %s1647_s28  ;;  %17 = sbr.rel (!%p15_p6) target bundleno = 5 (0x5), region = 88 }
 0x43c   : > { %s1640_s23 = smov %s1634_s26 }
 0x441   :  { %820 = vsyncpa [#allocation3], 1 }
 0x442   :  { %822 = vsyncpa [#allocation3 + $0x1], 1 }

</bundles_post_ra>
